<compile_context>
chip_gen: v5e
topology: v5e:2x2
jax: 0.10.0
libtpu: 0.0.40
codegen_flags: <defaults>
</compile_context>

<pallas_src>
import jax
import jax.numpy as jnp
from jax.experimental import pallas as pl
from jax.experimental.pallas import tpu as pltpu


def _round_up(n, m):
    return ((n + m - 1) // m) * m


def actor_kernel(x_ref, w1_ref, b1_ref, w2_ref, b2_ref, out_ref):
    # fc1: (BB, S) @ (S, Hp) bf16 operands, f32 MXU accumulation.
    h = jnp.dot(x_ref[...], w1_ref[...], preferred_element_type=jnp.float32)
    # Bias + ReLU epilogue in f32 (VPU-native on all generations).
    h = jnp.maximum(h + b1_ref[...], 0.0)
    # action head: (BB, Hp) @ (Hp, A); cast activations back to bf16 for the MXU,
    # keep f32 accumulation.
    a = jnp.dot(h.astype(w2_ref.dtype), w2_ref[...],
                preferred_element_type=jnp.float32)
    out_ref[...] = (a + b2_ref[...]).astype(out_ref.dtype)


def prepare_actor_params(w1, b1, w2, b2, *, compute_dtype=jnp.bfloat16):
    """One-time (off the hot path) padding + casting of the Actor parameters.

    w1: (num_state, 100); b1: (100,); w2: (100, num_action); b2: (num_action,)
    (already transposed to (in_features, out_features) layout).

    Hidden width is zero-padded 100 -> 128 so the fc1 activation and the second
    matmul's K dim are lane-dense; zero padding is exact for Linear->ReLU->Linear.
    Matmul operands are cast to bf16; biases stay f32 (added to the f32
    accumulator in-kernel).
    """
    S, H = w1.shape
    A = w2.shape[1]
    Hp = _round_up(H, 128)

    w1_p = jnp.pad(w1.astype(jnp.float32), ((0, 0), (0, Hp - H))).astype(compute_dtype)
    b1_p = jnp.pad(b1.astype(jnp.float32), (0, Hp - H)).reshape(1, Hp)
    w2_p = jnp.pad(w2.astype(jnp.float32), ((0, Hp - H), (0, 0))).astype(compute_dtype)
    b2_p = b2.astype(jnp.float32).reshape(1, A)
    return w1_p, b1_p, w2_p, b2_p


def actor_forward(x, w1_p, b1_p, w2_p, b2_p, *, block_b=512):
    """Actor forward: ReLU(x @ w1 + b1) @ w2 + b2.

    x: (B, num_state) float32/bf16; params from prepare_actor_params().
    Returns (B, num_action) float32.
    """
    B, S = x.shape
    Hp = w1_p.shape[1]
    A = w2_p.shape[1]
    compute_dtype = w1_p.dtype

    # Cast activations to the matmul dtype (halves x DMA bytes vs f32; fuses
    # away when this wrapper is called under an enclosing jit).
    x_c = x.astype(compute_dtype)

    # Batch tile: multiple of 8 sublanes; large tiles amortize per-grid-step
    # overhead and feed the MXU M-dim, while double-buffered bf16 activation
    # tiles stay tiny relative to VMEM on every generation (incl. v7x 64 MiB).
    BB = min(block_b, _round_up(B, 8))
    grid = (pl.cdiv(B, BB),)

    flops = 2 * B * (S * Hp + Hp * A)
    bytes_accessed = (x_c.dtype.itemsize * B * S
                      + w1_p.dtype.itemsize * S * Hp
                      + 4 * Hp
                      + w2_p.dtype.itemsize * Hp * A
                      + 4 * A
                      + 4 * B * A)

    out = pl.pallas_call(
        actor_kernel,
        out_shape=jax.ShapeDtypeStruct((B, A), jnp.float32),
        grid_spec=pltpu.PrefetchScalarGridSpec(
            num_scalar_prefetch=0,
            grid=grid,
            in_specs=[
                # Activations: streamed, tiled over the batch grid axis
                # (partial last block handled by Pallas; no wrapper-side pad).
                pl.BlockSpec((BB, S), lambda i: (i, 0)),
                # Weights / biases: same block every grid step -> resident in
                # VMEM, DMA'd once instead of per batch tile.
                pl.BlockSpec((S, Hp), lambda i: (0, 0)),
                pl.BlockSpec((1, Hp), lambda i: (0, 0)),
                pl.BlockSpec((Hp, A), lambda i: (0, 0)),
                pl.BlockSpec((1, A), lambda i: (0, 0)),
            ],
            # True-width output (A lanes, masked store) -> no padded slab,
            # no post-kernel slice copy.
            out_specs=pl.BlockSpec((BB, A), lambda i: (i, 0)),
        ),
        compiler_params=pltpu.CompilerParams(
            dimension_semantics=("parallel",),  # 2nd TC on v7x when grid >= 2
        ),
        cost_estimate=pl.CostEstimate(
            flops=flops, transcendentals=0, bytes_accessed=bytes_accessed
        ),
    )(x_c, w1_p, b1_p, w2_p, b2_p)

    return out


def init_actor_params(key, num_state, num_action, hidden=100):
    """Deterministic init mimicking nn.Linear's uniform(-1/sqrt(fan_in), ...)."""
    k1, k2, k3, k4 = jax.random.split(key, 4)
    bound1 = 1.0 / jnp.sqrt(num_state)
    bound2 = 1.0 / jnp.sqrt(hidden)
    # Stored already transposed: (in_features, out_features).
    w1 = jax.random.uniform(k1, (num_state, hidden), jnp.float32, -bound1, bound1)
    b1 = jax.random.uniform(k2, (hidden,), jnp.float32, -bound1, bound1)
    w2 = jax.random.uniform(k3, (hidden, num_action), jnp.float32, -bound2, bound2)
    b2 = jax.random.uniform(k4, (num_action,), jnp.float32, -bound2, bound2)
    return w1, b1, w2, b2


if __name__ == "__main__":
    num_state = 32
    num_action = 4
    batch = 8

    key = jax.random.PRNGKey(0)
    kx, kp = jax.random.split(key)
    x = jax.random.normal(kx, (batch, num_state), jnp.float32)
    w1, b1, w2, b2 = init_actor_params(kp, num_state, num_action)

    # One-time parameter prep (pad hidden width, cast to bf16).
    params = prepare_actor_params(w1, b1, w2, b2)

    # Call under jit so the wrapper-side activation cast fuses with the step.
    fwd = jax.jit(actor_forward)
    out = fwd(x, *params)
    out = jax.block_until_ready(out)

    # Reference check in plain JAX (f32, unpadded math). bf16 matmul operands
    # with f32 accumulation -> loosened tolerance.
    ref = jnp.maximum(x @ w1 + b1, 0.0) @ w2 + b2
    assert out.shape == (batch, num_action)
    assert jnp.allclose(out, ref, atol=3e-2, rtol=3e-2)

    print("KERNEL_OK")
</pallas_src>

<mosaic_0001>
module attributes {stable_mosaic.version = 11 : i64} {
  func.func @actor_kernel(%arg0: i32, %arg1: memref<8x32xbf16, #tpu.memory_space<vmem>>, %arg2: memref<32x128xbf16, #tpu.memory_space<vmem>>, %arg3: memref<1x128xf32, #tpu.memory_space<vmem>>, %arg4: memref<128x4xbf16, #tpu.memory_space<vmem>>, %arg5: memref<1x4xf32, #tpu.memory_space<vmem>>, %arg6: memref<8x4xf32, #tpu.memory_space<vmem>>) attributes {dimension_semantics = [#tpu.dimension_semantics<parallel>], iteration_bounds = array<i64: 1>, scalar_prefetch = 0 : i64, scratch_operands = 0 : i64, tpu.core_type = #tpu.core_type<tc>, window_params = [{transform_indices = @transform_0, window_bounds = array<i64: 8, 32>}, {pipeline_mode = #tpu.pipeline_mode<synchronous>, transform_indices = @transform_1, window_bounds = array<i64: 32, 128>}, {pipeline_mode = #tpu.pipeline_mode<synchronous>, transform_indices = @transform_2, window_bounds = array<i64: 1, 128>}, {pipeline_mode = #tpu.pipeline_mode<synchronous>, transform_indices = @transform_3, window_bounds = array<i64: 128, 4>}, {pipeline_mode = #tpu.pipeline_mode<synchronous>, transform_indices = @transform_4, window_bounds = array<i64: 1, 4>}, {transform_indices = @transform_5, window_bounds = array<i64: 8, 4>}]} {
    %c0 = arith.constant 0 : index
    %c0_0 = arith.constant 0 : index
    %0 = vector.load %arg1[%c0, %c0_0] : memref<8x32xbf16, #tpu.memory_space<vmem>>, vector<8x32xbf16>
    %c0_1 = arith.constant 0 : index
    %c0_2 = arith.constant 0 : index
    %1 = vector.load %arg2[%c0_1, %c0_2] : memref<32x128xbf16, #tpu.memory_space<vmem>>, vector<32x128xbf16>
    %cst = arith.constant dense<0.000000e+00> : vector<8x128xf32>
    %2 = tpu.matmul %0, %1, %cst {dimension_numbers = #tpu.dot_dimension_numbers<[1], [0], [0], [1], [0, 0, 1, 1], [], []>} : vector<8x32xbf16>, vector<32x128xbf16>, vector<8x128xf32> -> vector<8x128xf32>
    %c0_3 = arith.constant 0 : index
    %c0_4 = arith.constant 0 : index
    %3 = vector.load %arg3[%c0_3, %c0_4] : memref<1x128xf32, #tpu.memory_space<vmem>>, vector<1x128xf32>
    %4 = vector.broadcast %3 : vector<1x128xf32> to vector<8x128xf32>
    %5 = arith.addf %2, %4 : vector<8x128xf32>
    %cst_5 = arith.constant 0.000000e+00 : f32
    %6 = vector.broadcast %cst_5 : f32 to vector<8x128xf32>
    %7 = arith.maximumf %5, %6 : vector<8x128xf32>
    %8 = arith.truncf %7 : vector<8x128xf32> to vector<8x128xbf16>
    %c0_6 = arith.constant 0 : index
    %c0_7 = arith.constant 0 : index
    %9 = vector.load %arg4[%c0_6, %c0_7] : memref<128x4xbf16, #tpu.memory_space<vmem>>, vector<128x4xbf16>
    %cst_8 = arith.constant dense<0.000000e+00> : vector<8x4xf32>
    %10 = tpu.matmul %8, %9, %cst_8 {dimension_numbers = #tpu.dot_dimension_numbers<[1], [0], [0], [1], [0, 0, 1, 1], [], []>} : vector<8x128xbf16>, vector<128x4xbf16>, vector<8x4xf32> -> vector<8x4xf32>
    %c0_9 = arith.constant 0 : index
    %c0_10 = arith.constant 0 : index
    %11 = vector.load %arg5[%c0_9, %c0_10] : memref<1x4xf32, #tpu.memory_space<vmem>>, vector<1x4xf32>
    %12 = vector.broadcast %11 : vector<1x4xf32> to vector<8x4xf32>
    %13 = arith.addf %10, %12 : vector<8x4xf32>
    %c0_11 = arith.constant 0 : index
    %c0_12 = arith.constant 0 : index
    %14 = vector.load %arg6[%c0_11, %c0_12] : memref<8x4xf32, #tpu.memory_space<vmem>>, vector<8x4xf32>
    tpu.vector_store %arg6[%c0_11, %c0_12], %13 {strides = array<i32>} : memref<8x4xf32, #tpu.memory_space<vmem>>, vector<8x4xf32>,
    return
  }
  func.func @transform_0(%arg0: i32) -> (i32, i32) {
    %c0_i32 = arith.constant 0 : i32
    %c0_i32_0 = arith.constant 0 : i32
    return %arg0, %c0_i32 : i32, i32
  }
  func.func @transform_1(%arg0: i32) -> (i32, i32) {
    %c0_i32 = arith.constant 0 : i32
    %c0_i32_0 = arith.constant 0 : i32
    %c0_i32_1 = arith.constant 0 : i32
    return %c0_i32, %c0_i32_0 : i32, i32
  }
  func.func @transform_2(%arg0: i32) -> (i32, i32) {
    %c0_i32 = arith.constant 0 : i32
    %c0_i32_0 = arith.constant 0 : i32
    %c0_i32_1 = arith.constant 0 : i32
    return %c0_i32, %c0_i32_0 : i32, i32
  }
  func.func @transform_3(%arg0: i32) -> (i32, i32) {
    %c0_i32 = arith.constant 0 : i32
    %c0_i32_0 = arith.constant 0 : i32
    %c0_i32_1 = arith.constant 0 : i32
    return %c0_i32, %c0_i32_0 : i32, i32
  }
  func.func @transform_4(%arg0: i32) -> (i32, i32) {
    %c0_i32 = arith.constant 0 : i32
    %c0_i32_0 = arith.constant 0 : i32
    %c0_i32_1 = arith.constant 0 : i32
    return %c0_i32, %c0_i32_0 : i32, i32
  }
  func.func @transform_5(%arg0: i32) -> (i32, i32) {
    %c0_i32 = arith.constant 0 : i32
    %c0_i32_0 = arith.constant 0 : i32
    return %arg0, %c0_i32 : i32, i32
  }
}

</mosaic_0001>

<bundles_post_ra>
// kernel: actor_forward.1
= control target key start
LH: loop header
LB: loop body
LE: loop exit
PB: predicated region body
PF: predicated region fallthrough
CT: control target
= control target key end

     0   :  { %vm42_vm0 = vcmask 261120   ;;  %vm142_vm1 = vcmask 31744   ;;  %s273_s1 = inlined_call_operand.vmem [shape: bf16[32,128], index: 1, kind: input, shape index: {}]   ;;  %s274_s3 = inlined_call_operand.vmem [shape: bf16[128,4], index: 3, kind: input, shape index: {}]   ;;  %s275_s2 = inlined_call_operand.vmem [shape: f32[1,128], index: 2, kind: input, shape index: {}]   ;;  %s276_s0 = inlined_call_operand.vmem [shape: bf16[8,32], index: 0, kind: input, shape index: {}]   ;;  %s277_s4 = inlined_call_operand.vmem [shape: f32[1,4], index: 4, kind: input, shape index: {}]   ;;  %s278_s5 = inlined_call_operand.vmem [shape: f32[8,4], index: 5, kind: output, shape index: {}]  }
   0x1   :  { %v190_v0 = vld [vmem:[%s273_s1 + $0x8] sm:$0xff]  ;;  %v198_v1 = vld [vmem:[%s274_s3 + $0x38] sm:$0xff]  ;;  %v189_v2 = vld [vmem:[%s273_s1] sm:$0xff] }
   0x2   :  { %52 = vmatpush.bf16.msra.mxu0 %v190_v0  ;;  %129 = vmatpush.bf16.msra.mxu1 %v198_v1  ;;  %v197_v3 = vld [vmem:[%s274_s3 + $0x30] sm:$0xff]  ;;  %v21_v4 = vld [vmem:[%s276_s0] sm:$0xf]  ;;  %v196_v5 = vld [vmem:[%s274_s3 + $0x28] sm:$0xff] }
   0x3   :  { %v195_v6 = vld [vmem:[%s274_s3 + $0x20] sm:$0xff]  ;;  %v194_v7 = vld [vmem:[%s274_s3 + $0x18] sm:$0xff]  ;;  %v193_v8 = vld [vmem:[%s274_s3 + $0x10] sm:$0xff] }
   0x4   :  { %v192_v9 = vld [vmem:[%s274_s3 + $0x8] sm:$0xff]  ;;  %v191_v10 = vld [vmem:[%s274_s3] sm:$0xff] }
   0x5   :  { %v199_v11 = vld [vmem:[%s275_s2] ss:$0 sm:$0xff] }
   0x6   :  { %53 = vmatpush.bf16.msra.mxu0 %v189_v2  ;;  %130 = vmatpush.bf16.msra.mxu1 %v197_v3  ;;  %v200_v17 = vld [vmem:[%s277_s4] ss:$0 sm:$0xff] }
   0x9   :  { %156 = vmatmul.msk.bf16.vlgmr.msra.gmra.mxu0 %vm42_vm0, %v21_v4 }
   0xa   :  { %131 = vmatpush.bf16.msra.mxu1 %v196_v5 }
   0xe   :  { %132 = vmatpush.bf16.msra.mxu1 %v195_v6 }
  0x12   :  { %133 = vmatpush.bf16.msra.mxu1 %v194_v7 }
  0x16   :  { %134 = vmatpush.bf16.msra.mxu1 %v193_v8 }
  0x1a   :  { %135 = vmatpush.bf16.msra.mxu1 %v192_v9 }
  0x1e   :  { %136 = vmatpush.bf16.msra.mxu1 %v191_v10 }
  0x86   :  { %v55_v12 = vpop.f32.mrf.mxu0 }
  0x87   :  { %v56_v13 = vadd.f32 %v199_v11, %v55_v12 }
  0x89   :  { %v59_v14 = vmax.f32 %v56_v13, 0.0 }
  0x8b   :  { %v60_v15 = vpack.c.bf16 %v59_v14, %v59_v14 }
  0x8d   :  { %137 = vmatmul.bf16.vlgmr.msra.gmra.mxu1 %v60_v15 }
  0x8e   :  { %v57_v16 = vpop.f32.mrf.mxu0 }
 0x10a   :  { %v138_v18 = vpop.f32.mrf.mxu1 }
 0x10b   :  { %v139_v19 = vadd.f32 %v200_v17, %v138_v18 }
 0x10d   :  { %143 = vst.msk [vmem:[%s278_s5] sm:$0xff] %vm142_vm1, %v139_v19 }
 0x112   :  { %v140_v20 = vpop.f32.mrf.mxu1 }

</bundles_post_ra>
